<compile_context>
chip_gen: v6e
topology: v6e:2x2x1
jax: 0.10.0
libtpu: 0.0.40
codegen_flags: <defaults>
</compile_context>

<pallas_src>
import functools
import math

import jax
import jax.numpy as jnp
from jax.experimental import pallas as pl
from jax.experimental.pallas import tpu as pltpu

LN_EPS = 1e-5  # torch nn.LayerNorm default


# ---------------------------------------------------------------------------
# in-kernel math helpers (also used by the pure-JAX reference)
# ---------------------------------------------------------------------------
def _layernorm(x, gamma, beta):
    # torch LayerNorm: biased variance over last dim; rsqrt -> EUP slot
    mu = jnp.mean(x, axis=-1, keepdims=True)
    xc = x - mu
    var = jnp.mean(xc * xc, axis=-1, keepdims=True)
    return xc * jax.lax.rsqrt(var + LN_EPS) * gamma + beta


def _gelu_tanh(x):
    # tanh-approximation GELU (EUP slot); deviates from torch's exact erf GELU by <~3e-3
    c = jnp.float32(0.7978845608028654)  # sqrt(2/pi)
    return 0.5 * x * (1.0 + jnp.tanh(c * (x + 0.044715 * x * x * x)))


# ---------------------------------------------------------------------------
# VMEM budget: generation-dependent (leave ~25% headroom of physical VMEM)
# ---------------------------------------------------------------------------
def _vmem_limit_bytes():
    try:
        cap = pltpu.get_tpu_info().vmem_capacity_bytes
        return min(100 * 1024 * 1024, int(cap * 0.75))
    except Exception:
        return 48 * 1024 * 1024  # conservative fallback (fits v7x's 64 MiB/TC)


# ---------------------------------------------------------------------------
# Kernel 1: fused embedding-sum + LayerNorm  (grid over batch, "parallel")
# Tables arrive bf16 (half the HBM read volume); math runs in f32.
# ---------------------------------------------------------------------------
def embed_ln_kernel(tok_ref, pos_ref, typ_ref, g_ref, b_ref, o_ref):
    e = (tok_ref[0].astype(jnp.float32)
         + pos_ref[...].astype(jnp.float32)
         + typ_ref[0].astype(jnp.float32))                 # (T, H) f32
    o_ref[0] = _layernorm(e, g_ref[0], b_ref[0])


def run_embed_ln(tok_e, pos_e, typ_e, gamma, beta):
    B, T, H = tok_e.shape
    return pl.pallas_call(
        embed_ln_kernel,
        out_shape=jax.ShapeDtypeStruct((B, T, H), jnp.float32),
        grid=(B,),
        in_specs=[
            pl.BlockSpec((1, T, H), lambda b: (b, 0, 0)),   # token embeddings (bf16)
            pl.BlockSpec((T, H), lambda b: (0, 0)),          # position embeddings (shared, bf16)
            pl.BlockSpec((1, T, H), lambda b: (b, 0, 0)),   # token-type embeddings (bf16)
            pl.BlockSpec((1, H), lambda b: (0, 0)),          # LN gamma (f32)
            pl.BlockSpec((1, H), lambda b: (0, 0)),          # LN beta  (f32)
        ],
        out_specs=pl.BlockSpec((1, T, H), lambda b: (b, 0, 0)),
        compiler_params=pltpu.CompilerParams(dimension_semantics=("parallel",)),
    )(tok_e, pos_e, typ_e, gamma, beta)


# ---------------------------------------------------------------------------
# Kernel 2: the whole encoder stack.  grid = (B//Bb, n_layers); the (Bb,T,H)
# activation block is the output accumulator (resident in VMEM across the layer
# axis), per-layer bf16 weights are pipelined/prefetched by the layer grid axis
# and amortized over the Bb rows of the batch block.
# ---------------------------------------------------------------------------
def encoder_kernel(
    x_ref, mask_ref,
    wqkv_ref, bqkv_ref, wo_ref, bo_ref, ln1g_ref, ln1b_ref,
    w1_ref, b1_ref, w2_ref, b2_ref, ln2g_ref, ln2b_ref,
    o_ref, ctx_ref, *, num_heads, block_rows,
):
    layer = pl.program_id(1)

    # layer 0: seed the resident activation block with the (post-embedding-LN) input
    @pl.when(layer == 0)
    def _():
        o_ref[...] = x_ref[...]

    T = o_ref.shape[1]
    H = o_ref.shape[2]
    hd = H // num_heads
    scale = jnp.float32(1.0 / math.sqrt(hd))

    # layer weights loaded ONCE per grid step (shared across the Bb rows below)
    wqkv = wqkv_ref[0]                       # (H, 3H) bf16
    bqkv = bqkv_ref[0, 0]                    # (3H,)  f32
    wo = wo_ref[0]                           # (H, H) bf16
    bo = bo_ref[0, 0]
    ln1g, ln1b = ln1g_ref[0, 0], ln1b_ref[0, 0]
    w1, b1 = w1_ref[0], b1_ref[0, 0]         # (H, I) bf16, (I,) f32
    w2, b2 = w2_ref[0], b2_ref[0, 0]         # (I, H) bf16, (H,) f32
    ln2g, ln2b = ln2g_ref[0, 0], ln2b_ref[0, 0]

    for r in range(block_rows):              # static, small (Bb rows per grid step)
        x = o_ref[r]                         # (T, H) f32, carried across layers

        # additive attention bias over keys: 0 = keep, -1e9 = masked.
        # Broadcast to (T, T) once, OUTSIDE the head loop (no CSE of broadcast_in_dim).
        bias = (mask_ref[r, 0] - 1.0) * jnp.float32(1e9)               # (T,)
        bias_bc = jax.lax.broadcast_in_dim(bias, (T, T), (1,))          # (T, T)

        # ---- fused QKV projection (one long MXU matmul, bf16 in / f32 acc) ----
        xb = x.astype(jnp.bfloat16)
        qkv = jnp.dot(xb, wqkv, preferred_element_type=jnp.float32) + bqkv   # (T, 3H)
        qb = (qkv[:, :H] * scale).astype(jnp.bfloat16)      # fold 1/sqrt(hd) into q
        kb = qkv[:, H:2 * H].astype(jnp.bfloat16)
        vb = qkv[:, 2 * H:].astype(jnp.bfloat16)

        # ---- per-head attention; contexts written into a (T, H) bf16 VMEM scratch ----
        # TODO(synk): at production shapes convert this static unroll into
        # lax.fori_loop(..., unroll=True) over head GROUPS (group width multiple of
        # 256 on v6e/v7x, 128 on v5e) to bound live ranges of the (T,T) scores.
        for h in range(num_heads):
            sl = slice(h * hd, (h + 1) * hd)
            # scores: contraction over hd folded into the MXU (no kh.T materialization)
            wei = jax.lax.dot_general(
                qb[:, sl], kb[:, sl], (((1,), (1,)), ((), ())),
                preferred_element_type=jnp.float32)                     # (T, T)
            wei = wei + bias_bc
            wei = wei - jnp.max(wei, axis=-1, keepdims=True)
            p = jnp.exp(wei)
            # exact reciprocal: only T elems/head, avoids approx error growth with T
            p = p * pl.reciprocal(jnp.sum(p, axis=-1, keepdims=True))
            head = jnp.dot(p.astype(jnp.bfloat16), vb[:, sl],
                           preferred_element_type=jnp.float32)          # (T, hd)
            ctx_ref[:, sl] = head.astype(jnp.bfloat16)

        # ---- output projection: ONE K=H MXU matmul over the assembled context ----
        attn = jnp.dot(ctx_ref[...], wo, preferred_element_type=jnp.float32) + bo
        attn = _layernorm(attn, ln1g, ln1b)
        x1 = x + attn                                                   # residual 1

        # ---- MLP (bf16 MXU matmuls, tanh-GELU on the EUP) ----
        # TODO(synk): stream the I dimension (tile w1/w2 along I) for v7x at prod shapes.
        m = jnp.dot(x1.astype(jnp.bfloat16), w1,
                    preferred_element_type=jnp.float32) + b1
        m = _gelu_tanh(m)
        m = jnp.dot(m.astype(jnp.bfloat16), w2,
                    preferred_element_type=jnp.float32) + b2
        m = _layernorm(m, ln2g, ln2b)

        o_ref[r] = x1 + m                                               # residual 2


def run_encoder(x, mask3, enc, num_heads):
    B, T, H = x.shape
    L = enc["wqkv"].shape[0]

    # batch rows per grid step: amortizes per-layer weight DMA (v6e is weight-DMA
    # bound at 1 row).  TODO(synk): prefer Bb=1 + a q-tile parallel axis on v7x.
    bb = 2 if (B % 2 == 0) else 1

    def wspec(arr):
        # per-layer parameter: block = one layer's full tensor, indexed by the layer axis
        return pl.BlockSpec((1,) + arr.shape[1:], lambda b, l: (l, 0, 0))

    in_specs = [
        pl.BlockSpec((bb, T, H), lambda b, l: (b, 0, 0)),   # x (post-embedding)
        pl.BlockSpec((bb, 1, T), lambda b, l: (b, 0, 0)),   # mask
        wspec(enc["wqkv"]), wspec(enc["bqkv"]),
        wspec(enc["wo"]), wspec(enc["bo"]),
        wspec(enc["ln1_g"]), wspec(enc["ln1_b"]),
        wspec(enc["w1"]), wspec(enc["b1"]),
        wspec(enc["w2"]), wspec(enc["b2"]),
        wspec(enc["ln2_g"]), wspec(enc["ln2_b"]),
    ]
    out_spec = pl.BlockSpec((bb, T, H), lambda b, l: (b, 0, 0))

    kern = functools.partial(encoder_kernel, num_heads=num_heads, block_rows=bb)
    return pl.pallas_call(
        kern,
        out_shape=jax.ShapeDtypeStruct((B, T, H), jnp.float32),
        grid=(B // bb, L),
        in_specs=in_specs,
        out_specs=out_spec,
        scratch_shapes=[pltpu.VMEM((T, H), jnp.bfloat16)],   # assembled head contexts
        compiler_params=pltpu.CompilerParams(
            dimension_semantics=("parallel", "arbitrary"),
            vmem_limit_bytes=_vmem_limit_bytes(),
        ),
    )(
        x, mask3,
        enc["wqkv"], enc["bqkv"], enc["wo"], enc["bo"], enc["ln1_g"], enc["ln1_b"],
        enc["w1"], enc["b1"], enc["w2"], enc["b2"], enc["ln2_g"], enc["ln2_b"],
    )


# ---------------------------------------------------------------------------
# skBERT forward (Pallas)
# ---------------------------------------------------------------------------
def skbert_forward(params, input_ids, attn_mask, token_type_ids, num_heads):
    B, T = input_ids.shape
    # embedding table gathers are plain-JAX glue (tables stored bf16)
    tok_e = params["word_emb"][input_ids]                    # (B, T, H) bf16
    pos_e = params["pos_emb"][:T]                            # (T, H)    bf16
    typ_e = params["type_emb"][token_type_ids]               # (B, T, H) bf16

    x = run_embed_ln(tok_e, pos_e, typ_e, params["emb_ln_g"], params["emb_ln_b"])

    mask3 = attn_mask.astype(jnp.float32).reshape(B, 1, T)   # torch: mask[:, None, None, :]
    return run_encoder(x, mask3, params["enc"], num_heads)


# ---------------------------------------------------------------------------
# Pure-JAX reference (torch-structured math; same bf16-at-matmul-input precision
# and same GELU formulation so only kernel structure is being validated)
# ---------------------------------------------------------------------------
def skbert_ref(params, input_ids, attn_mask, token_type_ids, num_heads):
    B, T = input_ids.shape
    H = params["word_emb"].shape[1]
    hd = H // num_heads
    bf16, f32 = jnp.bfloat16, jnp.float32

    tok_e = params["word_emb"][input_ids].astype(f32)
    pos_e = params["pos_emb"][:T].astype(f32)
    typ_e = params["type_emb"][token_type_ids].astype(f32)
    x = tok_e + pos_e[None] + typ_e
    x = _layernorm(x, params["emb_ln_g"][0], params["emb_ln_b"][0])

    maskf = attn_mask.astype(f32)[:, None, None, :]
    e = params["enc"]
    L = e["wqkv"].shape[0]
    scale = 1.0 / math.sqrt(hd)

    def bdot(a, b):
        return jnp.dot(a.astype(bf16), b, preferred_element_type=f32)

    for l in range(L):
        qkv = bdot(x, e["wqkv"][l]) + e["bqkv"][l, 0]
        q, k, v = qkv[..., :H], qkv[..., H:2 * H], qkv[..., 2 * H:]
        qh = (q * scale).astype(bf16).reshape(B, T, num_heads, hd).transpose(0, 2, 1, 3)
        kh = k.astype(bf16).reshape(B, T, num_heads, hd).transpose(0, 2, 1, 3)
        vh = v.astype(bf16).reshape(B, T, num_heads, hd).transpose(0, 2, 1, 3)
        wei = jnp.einsum("bhtd,bhsd->bhts", qh, kh, preferred_element_type=f32)
        wei = jnp.where(maskf == 0.0, -1e9, wei)
        wei = jax.nn.softmax(wei, axis=-1)
        ctx = jnp.einsum("bhts,bhsd->bhtd", wei.astype(bf16), vh, preferred_element_type=f32)
        ctx = ctx.transpose(0, 2, 1, 3).reshape(B, T, H)
        out = bdot(ctx, e["wo"][l]) + e["bo"][l, 0]
        out = _layernorm(out, e["ln1_g"][l, 0], e["ln1_b"][l, 0])
        x = x + out
        m = _gelu_tanh(bdot(x, e["w1"][l]) + e["b1"][l, 0])
        m = bdot(m, e["w2"][l]) + e["b2"][l, 0]
        m = _layernorm(m, e["ln2_g"][l, 0], e["ln2_b"][l, 0])
        x = x + m
    return x


# ---------------------------------------------------------------------------
# deterministic parameter init (layer weights stacked with a leading n_layers dim;
# matmul weights + embedding tables bf16, biases / LN params f32)
# ---------------------------------------------------------------------------
def init_params(key, vocab, max_pos, H, n_layers):
    I = 4 * H
    L = n_layers
    ks = iter(jax.random.split(key, 256))
    std = 0.02

    def w(shape, dtype=jnp.bfloat16):
        return (jax.random.normal(next(ks), shape, jnp.float32) * std).astype(dtype)

    def b(shape):
        return jax.random.normal(next(ks), shape, jnp.float32) * std

    params = {
        "word_emb": w((vocab, H)),
        "pos_emb": w((max_pos, H)),
        "type_emb": w((2, H)),
        "emb_ln_g": 1.0 + b((1, H)),
        "emb_ln_b": b((1, H)),
        "enc": {
            # fused QKV weight (H, 3H): one long MXU stream per layer
            "wqkv": w((L, H, 3 * H)), "bqkv": b((L, 1, 3 * H)),
            "wo": w((L, H, H)), "bo": b((L, 1, H)),
            "ln1_g": 1.0 + b((L, 1, H)), "ln1_b": b((L, 1, H)),
            "w1": w((L, H, I)), "b1": b((L, 1, I)),
            "w2": w((L, I, H)), "b2": b((L, 1, H)),
            "ln2_g": 1.0 + b((L, 1, H)), "ln2_b": b((L, 1, H)),
        },
    }
    return params


if __name__ == "__main__":
    # small skBERTConfig: vocab=100, max_pos=64, hidden=32, layers=2, heads=4
    VOCAB, MAX_POS, H, N_LAYERS, N_HEADS = 100, 64, 32, 2, 4
    B, T = 2, 8

    key = jax.random.PRNGKey(0)
    k_param, k_ids = jax.random.split(key)
    params = init_params(k_param, VOCAB, MAX_POS, H, N_LAYERS)

    input_ids = jax.random.randint(k_ids, (B, T), 0, VOCAB, dtype=jnp.int32)
    token_type_ids = jnp.zeros((B, T), jnp.int32)
    attn_mask = jnp.ones((B, T), jnp.int32).at[1, 6:].set(0)   # pad out last 2 toks of row 1

    out = skbert_forward(params, input_ids, attn_mask, token_type_ids, N_HEADS)
    out = jax.block_until_ready(out)

    ref = skbert_ref(params, input_ids, attn_mask, token_type_ids, N_HEADS)
    assert out.shape == (B, T, H)
    assert bool(jnp.isfinite(out).all()), "non-finite values in kernel output"
    # bf16 matmuls: expected deviation vs the precision-matched reference is ~1e-3
    assert bool(jnp.allclose(out, ref, rtol=2e-2, atol=2e-2)), "mismatch vs pure-JAX reference"

    print("KERNEL_OK")
</pallas_src>

<mosaic_0001>
module attributes {stable_mosaic.version = 11 : i64} {
  func.func @embed_ln_kernel(%arg0: i32, %arg1: memref<1x8x32xbf16, #tpu.memory_space<vmem>>, %arg2: memref<8x32xbf16, #tpu.memory_space<vmem>>, %arg3: memref<1x8x32xbf16, #tpu.memory_space<vmem>>, %arg4: memref<1x32xf32, #tpu.memory_space<vmem>>, %arg5: memref<1x32xf32, #tpu.memory_space<vmem>>, %arg6: memref<1x8x32xf32, #tpu.memory_space<vmem>>) attributes {dimension_semantics = [#tpu.dimension_semantics<parallel>], iteration_bounds = array<i64: 2>, scalar_prefetch = 0 : i64, scratch_operands = 0 : i64, tpu.core_type = #tpu.core_type<tc>, window_params = [{transform_indices = @transform_0, window_bounds = array<i64: 1, 8, 32>}, {pipeline_mode = #tpu.pipeline_mode<synchronous>, transform_indices = @transform_1, window_bounds = array<i64: 8, 32>}, {transform_indices = @transform_2, window_bounds = array<i64: 1, 8, 32>}, {pipeline_mode = #tpu.pipeline_mode<synchronous>, transform_indices = @transform_3, window_bounds = array<i64: 1, 32>}, {pipeline_mode = #tpu.pipeline_mode<synchronous>, transform_indices = @transform_4, window_bounds = array<i64: 1, 32>}, {transform_indices = @transform_5, window_bounds = array<i64: 1, 8, 32>}]} {
    %c0 = arith.constant 0 : index
    %c0_0 = arith.constant 0 : index
    %c0_1 = arith.constant 0 : index
    %0 = vector.load %arg1[%c0, %c0_0, %c0_1] : memref<1x8x32xbf16, #tpu.memory_space<vmem>>, vector<1x8x32xbf16>
    %1 = vector.shape_cast %0 : vector<1x8x32xbf16> to vector<8x32xbf16>
    %2 = arith.extf %1 : vector<8x32xbf16> to vector<8x32xf32>
    %c0_2 = arith.constant 0 : index
    %c0_3 = arith.constant 0 : index
    %3 = vector.load %arg2[%c0_2, %c0_3] : memref<8x32xbf16, #tpu.memory_space<vmem>>, vector<8x32xbf16>
    %4 = arith.extf %3 : vector<8x32xbf16> to vector<8x32xf32>
    %5 = arith.addf %2, %4 : vector<8x32xf32>
    %c0_4 = arith.constant 0 : index
    %c0_5 = arith.constant 0 : index
    %c0_6 = arith.constant 0 : index
    %6 = vector.load %arg3[%c0_4, %c0_5, %c0_6] : memref<1x8x32xbf16, #tpu.memory_space<vmem>>, vector<1x8x32xbf16>
    %7 = vector.shape_cast %6 : vector<1x8x32xbf16> to vector<8x32xbf16>
    %8 = arith.extf %7 : vector<8x32xbf16> to vector<8x32xf32>
    %9 = arith.addf %5, %8 : vector<8x32xf32>
    %c0_7 = arith.constant 0 : index
    %c0_8 = arith.constant 0 : index
    %10 = vector.load %arg4[%c0_7, %c0_8] : memref<1x32xf32, #tpu.memory_space<vmem>>, vector<1x32xf32>
    %11 = vector.shape_cast %10 : vector<1x32xf32> to vector<32xf32>
    %c0_9 = arith.constant 0 : index
    %c0_10 = arith.constant 0 : index
    %12 = vector.load %arg5[%c0_9, %c0_10] : memref<1x32xf32, #tpu.memory_space<vmem>>, vector<1x32xf32>
    %13 = vector.shape_cast %12 : vector<1x32xf32> to vector<32xf32>
    %cst = arith.constant dense<0.000000e+00> : vector<8xf32>
    %14 = vector.multi_reduction <add>, %9, %cst [1] : vector<8x32xf32> to vector<8xf32>
    %15 = vector.shape_cast %14 : vector<8xf32> to vector<8x1xf32>
    %cst_11 = arith.constant 3.200000e+01 : f32
    %16 = vector.broadcast %cst_11 : f32 to vector<8x1xf32>
    %17 = arith.divf %15, %16 : vector<8x1xf32>
    %18 = vector.broadcast %17 : vector<8x1xf32> to vector<8x32xf32>
    %19 = arith.subf %9, %18 : vector<8x32xf32>
    %20 = arith.mulf %19, %19 : vector<8x32xf32>
    %cst_12 = arith.constant dense<0.000000e+00> : vector<8xf32>
    %21 = vector.multi_reduction <add>, %20, %cst_12 [1] : vector<8x32xf32> to vector<8xf32>
    %22 = vector.shape_cast %21 : vector<8xf32> to vector<8x1xf32>
    %cst_13 = arith.constant 3.200000e+01 : f32
    %23 = vector.broadcast %cst_13 : f32 to vector<8x1xf32>
    %24 = arith.divf %22, %23 : vector<8x1xf32>
    %cst_14 = arith.constant 9.99999974E-6 : f32
    %25 = vector.broadcast %cst_14 : f32 to vector<8x1xf32>
    %26 = arith.addf %24, %25 : vector<8x1xf32>
    %27 = math.rsqrt %26 : vector<8x1xf32>
    %28 = vector.broadcast %27 : vector<8x1xf32> to vector<8x32xf32>
    %29 = arith.mulf %19, %28 : vector<8x32xf32>
    %30 = vector.shape_cast %11 : vector<32xf32> to vector<1x32xf32>
    %31 = vector.broadcast %30 : vector<1x32xf32> to vector<8x32xf32>
    %32 = arith.mulf %29, %31 : vector<8x32xf32>
    %33 = vector.shape_cast %13 : vector<32xf32> to vector<1x32xf32>
    %34 = vector.broadcast %33 : vector<1x32xf32> to vector<8x32xf32>
    %35 = arith.addf %32, %34 : vector<8x32xf32>
    %c0_15 = arith.constant 0 : index
    %c0_16 = arith.constant 0 : index
    %c0_17 = arith.constant 0 : index
    %36 = vector.load %arg6[%c0_15, %c0_16, %c0_17] : memref<1x8x32xf32, #tpu.memory_space<vmem>>, vector<1x8x32xf32>
    %37 = vector.shape_cast %36 : vector<1x8x32xf32> to vector<8x32xf32>
    %38 = vector.shape_cast %35 : vector<8x32xf32> to vector<1x8x32xf32>
    tpu.vector_store %arg6[%c0_15, %c0_16, %c0_17], %38 {strides = array<i32>} : memref<1x8x32xf32, #tpu.memory_space<vmem>>, vector<1x8x32xf32>,
    return
  }
  func.func @transform_0(%arg0: i32) -> (i32, i32, i32) {
    %c0_i32 = arith.constant 0 : i32
    %c0_i32_0 = arith.constant 0 : i32
    %c0_i32_1 = arith.constant 0 : i32
    return %arg0, %c0_i32, %c0_i32_0 : i32, i32, i32
  }
  func.func @transform_1(%arg0: i32) -> (i32, i32) {
    %c0_i32 = arith.constant 0 : i32
    %c0_i32_0 = arith.constant 0 : i32
    %c0_i32_1 = arith.constant 0 : i32
    return %c0_i32, %c0_i32_0 : i32, i32
  }
  func.func @transform_2(%arg0: i32) -> (i32, i32, i32) {
    %c0_i32 = arith.constant 0 : i32
    %c0_i32_0 = arith.constant 0 : i32
    %c0_i32_1 = arith.constant 0 : i32
    return %arg0, %c0_i32, %c0_i32_0 : i32, i32, i32
  }
  func.func @transform_3(%arg0: i32) -> (i32, i32) {
    %c0_i32 = arith.constant 0 : i32
    %c0_i32_0 = arith.constant 0 : i32
    %c0_i32_1 = arith.constant 0 : i32
    return %c0_i32, %c0_i32_0 : i32, i32
  }
  func.func @transform_4(%arg0: i32) -> (i32, i32) {
    %c0_i32 = arith.constant 0 : i32
    %c0_i32_0 = arith.constant 0 : i32
    %c0_i32_1 = arith.constant 0 : i32
    return %c0_i32, %c0_i32_0 : i32, i32
  }
  func.func @transform_5(%arg0: i32) -> (i32, i32, i32) {
    %c0_i32 = arith.constant 0 : i32
    %c0_i32_0 = arith.constant 0 : i32
    %c0_i32_1 = arith.constant 0 : i32
    return %arg0, %c0_i32, %c0_i32_0 : i32, i32, i32
  }
}

</mosaic_0001>

<bundles_post_ra>
// kernel: tpu_custom_call.1
= control target key start
LH: loop header
LB: loop body
LE: loop exit
PB: predicated region body
PF: predicated region fallthrough
CT: control target
= control target key end

     0   :  { %10 = vsyncpa [#allocation3], 0  ;;  %s923_s0 = inlined_call_operand.hbm [shape: bf16[2,8,32], index: 0, kind: input, shape index: {}]   ;;  %s924_s1 = inlined_call_operand.hbm [shape: bf16[8,32], index: 1, kind: input, shape index: {}]   ;;  %s925_s2 = inlined_call_operand.hbm [shape: bf16[2,8,32], index: 2, kind: input, shape index: {}]   ;;  %s926_s3 = inlined_call_operand.vmem [shape: f32[1,32], index: 3, kind: input, shape index: {}]   ;;  %s927_s4 = inlined_call_operand.vmem [shape: f32[1,32], index: 4, kind: input, shape index: {}]   ;;  %s928_s5 = inlined_call_operand.hbm [shape: f32[2,8,32], index: 5, kind: output, shape index: {}]  }
   0x1   :  { %12 = vsyncpa [#allocation3 + $0x1], 0 }
   0x2   :  { %13 = vsyncpa [#allocation6], 0 }
   0x3   :  { %14 = vsyncpa [#allocation4], 0 }
   0x4   :  { %16 = vsyncpa [#allocation4 + $0x1], 0  ;;  %s714_s18 = smov 0   ;;  %s716_s19 = smov 0  }
   0x5   :  { %s718_s20 = smov 0   ;;  %s720_s21 = smov 0  }
   0x6 LB: > { %s735_s22 = sadd.s32 1, %s678_s21   ;;  %s29_s23 = sadd.s32 1, %s674_s20  ;;  %s678_s21 = sphi %s720_s21, %s953_s21   ;;  %s674_s20 = sphi %s718_s20, %s952_s20   ;;  %s670_s19 = sphi %s716_s19, %s951_s19   ;;  %s666_s18 = sphi %s714_s18, %s950_s18  }
   0x7   : > { %s26_s24 = ssub.s32 %s678_s21, %s735_s22  ;;  %p929_p0 = scmp.ne.s32.totalorder %s674_s20, %s670_s19 }
   0x8   : > { %p27_p1 = scmp.eq.s32.totalorder %s26_s24, 0  ;;  %p37_p2 = scmp.eq.s32.totalorder %s678_s21, 0 }
   0x9   : > { %p486_p4 = scmp.lt.s32.totalorder %s678_s21, 2  ;;  %s198_s26 = sand.u32 1, %s678_s21  }
   0xa   : > { %s746_s25 = scalar_select %p27_p1, %s674_s20, %s29_s23  }
   0xb   : > { %p38_p5 = por %p37_p2, %p929_p0  ;;  %s200_s27 = sand.u32 1, %s674_s20  }
   0xc   : > { %s753_s28 = sshll.u32 %s200_s27, 2  ;;  %s446_s29 = sshll.u32 %s678_s21, 6 }
   0xd   : > { %s761_s7 = scalar_lea.hbm %s923_s0, %s446_s29  ;;  %s202_s8 = scalar_lea.vmem [#allocation2], %s753_s28 }
   0xe   : > { %s209_s9 = sshll.u32 %s202_s8, 4  ;;  %p764_p6 = pnand %p486_p4, %p38_p5  ;;  %s210_s9 = int_to_ptr.vmem [resolvable:$true] %s209_s9 }
   0xf   : > { %s768_s11 = scalar_lea.sflag [#allocation3], %s198_s26  ;;  %s524_s12 = scalar_lea.hbm %s761_s7, 64 }
  0x10   : > { %p525_p7 = scmp.ne.s32.totalorder %s761_s7, %s524_s12  ;;  %p526_p8 = pneg %p764_p6 }
  0x11   : > { %s529_s15 = scalar_lea.hbm %s923_s0, 128  ;;  %p530_p11 = scmp.lt.s32.totalorder %s761_s7, %s923_s0 }
  0x12   : > { %p527_p9 = pnand %p526_p8, %p525_p7  ;;  %p531_p12 = scmp.lt.s32.totalorder %s529_s15, %s524_s12 }
  0x14   : > { %p528_p10 = pneg %p527_p9  ;;  %p532_p13 = por %p531_p12, %p530_p11 }
  0x16   : > { %p533_p1 = pnand %p532_p13, %p528_p10 }
  0x18   : > { %536 = shalt.err (!%p533_p1)
}
  0x19   : > { %s537_s23 = scalar_lea.vmem %s210_s9, 64  ;;  %s680_s24 = smov [#allocation2]  }
  0x1a   : > { %p538_p2 = scmp.ne.s32.totalorder %s210_s9, %s537_s23  ;;  %s542_s26 = sshll.u32 %s680_s24, 4  ;;  %s543_s26 = int_to_ptr.vmem [resolvable:$false] %s542_s26 }
  0x1b   : > { %s544_s27 = scalar_lea.vmem %s543_s26, 128  ;;  %p545_p7 = scmp.lt.s32.totalorder %s210_s9, %s543_s26 }
  0x1c   : > { %p540_p4 = pnand %p538_p2, %p526_p8  ;;  %p546_p9 = scmp.lt.s32.totalorder %s544_s27, %s537_s23 }
  0x1e   : > { %p541_p5 = pneg %p540_p4  ;;  %p547_p3 = por %p546_p9, %p545_p7 }
  0x20   : > { %p548_p0 = pnand %p547_p3, %p541_p5 }
  0x22   : > { %551 = shalt.err (!%p548_p0)
}
  0x23   : > { %477 = dma.hbm_to_vmem [thread:$0]  (!%p764_p6), %s761_s7, 64, %s210_s9, %s768_s11  }
  0x24   : > { %s792_s30 = sadd.s32 4294967295, %s678_s21   ;;  %s441_s6 = sadd.s32 4294967294, %s678_s21  }
  0x25   : > { %p42_p0 = scmp.ne.s32.totalorder %s670_s19, %s666_s18  ;;  %p930_p3 = scmp.eq.s32.totalorder %s792_s30, 0 }
  0x26   : > { %p155_p10 = scmp.eq.s32.totalorder %s792_s30, 1  ;;  %p161_p11 = scmp.eq.s32.totalorder %s441_s6, 1 }
  0x27   : > { %p801_p12 = por %p930_p3, %p42_p0  ;;  %p442_p13 = scmp.ge.s32.totalorder %s678_s21, 1 }
  0x28   : > { %p937_p1 = scmp.ne.s32.totalorder %s674_s20, %s670_s19  ;;  %p813_p4 = por %p161_p11, %p42_p0 }
  0x29   : > { %s936_s8 = scalar_select %p801_p12, 1, 0 }
  0x2a   : > { %p809_p2 = por %p155_p10, %p937_p1  ;;  %p168_p5 = scmp.lt.s32.totalorder %s678_s21, 3 }
  0x2b   : > { %s939_s9 = scalar_select %p813_p4, 1, 0 }
  0x2c   : > { %s938_s7 = scalar_select %p809_p2, 1, 0 }
  0x2d   : > { %s220_s12 = scalar_lea.vmem [#allocation7], %s753_s28  ;;  %s824_s16 = scalar_lea.hbm %s925_s2, %s446_s29 }
  0x2e   : > { %s227_s13 = sshll.u32 %s220_s12, 4  ;;  %p826_p7 = pnand %p442_p13, %p168_p5  ;;  %s228_s13 = int_to_ptr.vmem [resolvable:$true] %s227_s13 }
  0x2f   : > { %s681_s23 = smov [#allocation5]   ;;  %s552_s28 = scalar_lea.hbm %s824_s16, 64 }
  0x30   : > { %s940_s17 = scalar_select %p826_p7, 1, 0 }
  0x31   : > { %s181_s24 = sshll.u32 %s681_s23, 4  ;;  %p553_p0 = scmp.ne.s32.totalorder %s824_s16, %s552_s28  ;;  %s182_s24 = int_to_ptr.vmem [resolvable:$true] %s181_s24 }
  0x32   : > { %s557_s27 = scalar_lea.hbm %s925_s2, 128  ;;  %p558_p13 = scmp.lt.s32.totalorder %s824_s16, %s925_s2 }
  0x33   : > { %p555_p10 = pnand %p553_p0, %p526_p8  ;;  %p559_p1 = scmp.lt.s32.totalorder %s557_s27, %s552_s28 }
  0x35   : > { %p556_p11 = pneg %p555_p10  ;;  %p560_p5 = por %p559_p1, %p558_p13 }
  0x37   : > { %p561_p3 = pnand %p560_p5, %p556_p11 }
  0x39   : > { %564 = shalt.err (!%p561_p3)
}
  0x3a   : > { %s565_s14 = scalar_lea.vmem %s228_s13, 64  ;;  %s682_s15 = smov [#allocation7]  }
  0x3b   : > { %p566_p9 = scmp.ne.s32.totalorder %s228_s13, %s565_s14  ;;  %s570_s23 = sshll.u32 %s682_s15, 4  ;;  %s571_s23 = int_to_ptr.vmem [resolvable:$false] %s570_s23 }
  0x3c   : > { %s572_s29 = scalar_lea.vmem %s571_s23, 128  ;;  %p573_p10 = scmp.lt.s32.totalorder %s228_s13, %s571_s23 }
  0x3d   : > { %p568_p4 = pnand %p566_p9, %p526_p8  ;;  %p574_p2 = scmp.lt.s32.totalorder %s572_s29, %s565_s14 }
  0x3f   : > { %p569_p0 = pneg %p568_p4  ;;  %p575_p12 = por %p574_p2, %p573_p10 }
  0x41   : > { %p576_p7 = pnand %p575_p12, %p569_p0 }
  0x43   : > { %579 = shalt.err (!%p576_p7)
}
  0x44   : > { %480 = dma.hbm_to_vmem [thread:$0]  (!%p764_p6), %s824_s16, 64, %s228_s13, %s768_s11  }
  0x45   : > { %p941_p3 = scmp.eq.s32.totalorder %s792_s30, 0  ;;  %p942_p8 = scmp.ne.s32.totalorder %s940_s17, 0 }
  0x46   : > { %s591_s28 = scalar_lea.vmem %s182_s24, 64  ;;  %p599_p2 = scmp.lt.s32.totalorder %s182_s24, %s182_s24 }
  0x47   : > { %p943_p4 = pneg %p942_p8  ;;  %p592_p13 = scmp.ne.s32.totalorder %s182_s24, %s591_s28 }
  0x48   : > { %p600_p12 = scmp.lt.s32.totalorder %s591_s28, %s591_s28 }
  0x49   : > { %p471_p9 = pnand %p943_p4, %p941_p3 }
  0x4a   : > { %p601_p7 = por %p600_p12, %p599_p2 }
  0x4b   : > { %p582_p11 = pneg %p471_p9 }
  0x4d   : > { %p594_p1 = pnand %p592_p13, %p582_p11 }
  0x4f   : > { %p595_p5 = pneg %p594_p1 }
  0x51   : > { %p602_p0 = pnand %p601_p7, %p595_p5 }
  0x53   : > { %605 = shalt.err (!%p602_p0)
}
  0x54   : > { %473 = dma.hbm_to_vmem [thread:$0]  (!%p471_p9), %s924_s1, 64, %s182_s24, [#allocation6]  }
  0x55   : > { %236 = sbr.rel (%p942_p8) target bundleno = 425 (0x1a9), region = 40  ;;  %s238_s11 = sand.u32 (!%p942_p8), 1, %s792_s30  }
  0x56   : > { %s863_s13 = sand.u32 (!%p942_p8), 1, %s670_s19   ;;  %s239_s27 = scalar_lea.sflag (!%p942_p8), [#allocation3], %s238_s11 }
  0x57   : > { %s450_s16 = sshll.u32 (!%p942_p8), %s863_s13, 2  ;;  %p944_p6 = scmp.ne.s32.totalorder (!%p942_p8), %s936_s8, 0 }
  0x58   : > { %s242_s6 = scalar_lea.vmem (!%p942_p8), [#allocation2], %s450_s16 }
  0x5a   : > { %649 = dma.done.wait (%p944_p6), %s239_s27, 64  }
  0x5b   : > { %651 = vsyncadd (%p944_p6), %s239_s27, 4294967232  ;;  %p945_p10 = scmp.eq.s32.totalorder %s792_s30, 0 }
  0x5d   : > { %653 = dma.done.wait (%p945_p10), [#allocation6], 64   ;;  %p946_p3 = pmov %p945_p10 }
  0x5e   : > { %s255_s17 = scalar_lea.vmem [#allocation7], %s450_s16 }
  0x5f   : > { %655 = vsyncadd (%p946_p3), [#allocation6], 4294967232 }
  0x60   : > { %657 = dma.done.wait (%p944_p6), %s239_s27, 64  }
  0x61   : > { %659 = vsyncadd (%p944_p6), %s239_s27, 4294967232  ;;  %v287_v0 = vld [vmem:[%s242_s6] sm:$0xf]  ;;  %v289_v1 = vld [vmem:[#allocation5] sm:$0xf]  ;;  %vm297_vm0 = vcmask 261120  }
  0x62   : > { %v292_v2 = vld [vmem:[%s255_s17] sm:$0xf]  ;;  %v288_v3 = vunpack.c.l.bf16 %v287_v0  ;;  %v290_v4 = vunpack.c.l.bf16 %v289_v1  ;;  %s453_s8 = sshll.u32 %s863_s13, 3  ;;  %v454_v18 = vld [vmem:[%s926_s3] ss:$0 sm:$0xff]  ;;  %s457_s23 = sshll.u32 %s792_s30, 7 }
  0x63   : > { %v293_v5 = vunpack.c.l.bf16 %v292_v2  ;;  %v455_v20 = vld [vmem:[%s927_s4] ss:$0 sm:$0xff]  ;;  %s286_s29 = scalar_lea.vmem [#allocation8], %s453_s8  ;;  %s339_s11 = scalar_lea.hbm %s928_s5, %s457_s23 }
  0x64   : > { %v291_v6 = vadd.f32 %v290_v4, %v288_v3  ;;  %s341_s28 = sshll.u32 %s286_s29, 4  ;;  %s328_s16 = scalar_lea.sflag [#allocation4], %s863_s13  ;;  %s342_s28 = int_to_ptr.vmem [resolvable:$true] %s341_s28 }
  0x65   : > { %s606_s27 = scalar_lea.vmem %s342_s28, 128  ;;  %p947_p4 = scmp.ne.s32.totalorder %s938_s7, 0 }
  0x66   : > { %v294_v7 = vadd.f32 %v293_v5, %v291_v6  ;;  %p607_p8 = scmp.ne.s32.totalorder %s342_s28, %s606_s27  ;;  %s683_s6 = smov [#allocation8]  }
  0x67   : > { %s610_s17 = sshll.u32 %s683_s6, 4  ;;  %s611_s17 = int_to_ptr.vmem [resolvable:$false] %s610_s17 }
  0x68   : > { %v298_v8 = vsel %vm297_vm0, %v294_v7, 0.0  ;;  %p608_p9 = pnand %p607_p8, %p947_p4  ;;  %s612_s30 = scalar_lea.vmem %s611_s17, 256 }
  0x69   : > { %299 = vadd.xlane.f32.xlu0 %v298_v8  ;;  %p613_p13 = scmp.lt.s32.totalorder %s342_s28, %s611_s17  ;;  %p614_p1 = scmp.lt.s32.totalorder %s612_s30, %s606_s27 }
  0x6a   : > { %p609_p11 = pneg %p608_p9 }
  0x6b   : > { %p615_p5 = por %p614_p1, %p613_p13 }
  0x6d   : > { %p616_p2 = pnand %p615_p5, %p609_p11 }
  0xf2   : > { %v300_v9 = vpop.xlane.xlu0 %299 }
  0xf3   : > { %v302_v10 = vmul.f32 0.03125, %v300_v9 }
  0xf5   : > { %v303_v11 = vsub.f32 %v294_v7, %v302_v10 }
  0xf7   : > { %v304_v12 = vmul.f32 %v303_v11, %v303_v11 }
  0xf9   : > { %v305_v13 = vsel %vm297_vm0, %v304_v12, 0.0 }
  0xfa   : > { %306 = vadd.xlane.f32.xlu0 %v305_v13 }
 0x183   : > { %v307_v14 = vpop.xlane.xlu0 %306 }
 0x184   : > { %v308_v15 = vmul.f32 0.03125, %v307_v14 }
 0x186   : > { %v309_v16 = vadd.f32 1e-05, %v308_v15 }
 0x188   : > { %522 = vrsqrt.f32 %v309_v16 }
 0x195   : > { %v523_v17 = vpop.eup %522 }
 0x196   : > { %v311_v19 = vmul.f32 %v523_v17, %v303_v11 }
 0x198   : > { %v318_v21 = vmul.f32 %v454_v18, %v311_v19 }
 0x19a   : > { %v325_v22 = vadd.f32 %v455_v20, %v318_v21 }
 0x19c   : > { %326 = vst.msk [vmem:[%s286_s29] sm:$0xff] %vm297_vm0, %v325_v22 }
 0x19d   : > { %619 = shalt.err (!%p616_p2)
}
 0x19e   : > { %s620_s8 = scalar_lea.hbm %s339_s11, 128  ;;  %s624_s12 = scalar_lea.hbm %s928_s5, 256 }
 0x19f   : > { %p621_p12 = scmp.ne.s32.totalorder %s339_s11, %s620_s8  ;;  %p625_p6 = scmp.lt.s32.totalorder %s339_s11, %s928_s5 }
 0x1a0   : > { %p626_p10 = scmp.lt.s32.totalorder %s624_s12, %s620_s8 }
 0x1a1   : > { %p622_p7 = pnand %p621_p12, %p947_p4 }
 0x1a2   : > { %p627_p3 = por %p626_p10, %p625_p6 }
 0x1a3   : > { %p623_p0 = pneg %p622_p7 }
 0x1a5   : > { %p628_p8 = pnand %p627_p3, %p623_p0 }
 0x1a7   : > { %631 = shalt.err (!%p628_p8)
}
 0x1a8   : > { %468 = dma.vmem_to_hbm [thread:$0]  (%p947_p4), %s342_s28, 128, %s339_s11, %s328_s16  }
 0x1a9 PF: > { %s353_s23 = sand.u32 1, %s666_s18   ;;  %p948_p9 = scmp.ne.s32.totalorder %s939_s9, 0 }
 0x1aa   : > { %p949_p11 = scmp.ge.s32.totalorder %s678_s21, 2  ;;  %s354_s29 = scalar_lea.sflag [#allocation4], %s353_s23 }
 0x1ac   : > { %p482_p13 = pnand %p949_p11, %p948_p9 }
 0x1ae   : > { %p483_p1 = pneg %p482_p13 }
 0x1b0   : > { %661 = dma.done.wait (%p483_p1), %s354_s29, 128  }
 0x1b1   : > { %663 = vsyncadd (%p483_p1), %s354_s29, 4294967168  ;;  %p19_p5 = scmp.ge.s32.totalorder %s735_s22, 4   ;;  %s950_s18 = smov %s670_s19 }
 0x1b2   : > { %s951_s19 = smov %s674_s20  ;;  %s952_s20 = smov %s746_s25 }
 0x1b3   : > { %s953_s21 = smov %s735_s22  ;;  %21 = sbr.rel (!%p19_p5) target bundleno = 6 (0x6), region = 100 }
 0x1b8   :  { %359 = vsyncpa [#allocation3], 1 }
 0x1b9   :  { %361 = vsyncpa [#allocation3 + $0x1], 1 }
 0x1ba   :  { %362 = vsyncpa [#allocation6], 1 }
 0x1bb   :  { %363 = vsyncpa [#allocation4], 1 }
 0x1bc   :  { %365 = vsyncpa [#allocation4 + $0x1], 1 }

</bundles_post_ra>
